<compile_context>
chip_gen: v6e
topology: v6e:2x2x1
jax: 0.10.0
libtpu: 0.0.40
codegen_flags: <defaults>
</compile_context>

<pallas_src>
import functools

import numpy as np
import jax
import jax.numpy as jnp
from jax import lax
from jax.experimental import pallas as pl
from jax.experimental.pallas import tpu as pltpu

LN_EPS = 1e-5  # PyTorch nn.LayerNorm default


def _ln(x, g, b):
    mu = jnp.mean(x, axis=-1, keepdims=True)
    var = jnp.mean((x - mu) ** 2, axis=-1, keepdims=True)
    return (x - mu) * lax.rsqrt(var + LN_EPS) * g + b


def _gelu_exact(x):
    # PyTorch nn.GELU default (erf-based)
    return 0.5 * x * (1.0 + lax.erf(x * 0.7071067811865476))


# ------------------- patchify (VPU fma) + fused pos-embed -------------------

def _patchify_kernel(x_ref, w_ref, b_ref, pos_ref, o_ref):
    # x_ref: (tt, K)  w_ref: (K, E)  b_ref: (1, E)  pos_ref: (tt, E)
    K = x_ref.shape[1]
    acc = b_ref[...] + pos_ref[...]          # conv bias + positional embedding
    for k in range(K):                       # K = C*patch_width (=2): unrolled VPU fma
        acc = acc + x_ref[:, k:k + 1] * w_ref[k:k + 1, :]
    o_ref[...] = acc


def patchify_pallas(img, wpatch, bpatch, pos, pw):
    """Conv2d(C, E, kernel=(1,pw), stride=(1,pw)) + pos -> (B, T, E), T = H*(W//pw)."""
    B, C, H, W = img.shape
    Wp = W // pw
    T = H * Wp
    K = C * pw
    E = wpatch.shape[1]
    x = img.reshape(B, C, H, Wp, pw)
    x = jnp.transpose(x, (0, 2, 3, 1, 4)).reshape(B, T, K)   # rows ordered (h, w)
    tt = T if T <= 512 else 512
    assert T % tt == 0
    return pl.pallas_call(
        _patchify_kernel,
        out_shape=jax.ShapeDtypeStruct((B, T, E), jnp.float32),
        grid=(B, T // tt),
        in_specs=[pl.BlockSpec((None, tt, K), lambda b, t: (b, t, 0)),
                  pl.BlockSpec((K, E), lambda b, t: (0, 0)),
                  pl.BlockSpec((1, E), lambda b, t: (0, 0)),
                  pl.BlockSpec((tt, E), lambda b, t: (t, 0))],
        out_specs=pl.BlockSpec((None, tt, E), lambda b, t: (b, t, 0)),
        compiler_params=pltpu.CompilerParams(
            dimension_semantics=("parallel", "parallel")),
    )(x, wpatch, bpatch, pos)


# --------------- fused transformer stack + final LayerNorm -----------------

def _encoder_stack_kernel(x_ref, mask_ref, ln1g, ln1b, wqkv, wproj, bproj,
                          ln2g, ln2b, w1, b1, w2, b2, lnfg, lnfb, o_ref,
                          *, num_heads, num_layers):
    Bt, T, E = x_ref.shape
    M = Bt * T
    dh = E // num_heads
    scale = float(dh) ** -0.5
    bf16 = jnp.bfloat16
    key_bias = mask_ref[...]                   # (1, T_pad): 0 for real keys, -1e30 for pad

    def layer_body(l, a):
        # ---------------- multi-head self-attention (pre-LN) ----------------
        h = _ln(a, ln1g[l], ln1b[l])
        qkv = jnp.dot(h.astype(bf16), wqkv[l],
                      preferred_element_type=jnp.float32)          # (M, 3E)

        def heads(base):   # (H*Bt, T, dh): static lane slices, leading-axis group
            return jnp.concatenate(
                [qkv[:, base + i * dh: base + (i + 1) * dh].reshape(Bt, T, dh)
                 for i in range(num_heads)], axis=0)

        q = heads(0)
        k = heads(E)
        v = heads(2 * E)
        s = jnp.einsum('gqd,gkd->gqk', q.astype(bf16), k.astype(bf16),
                       preferred_element_type=jnp.float32) * scale  # (G, T, T)
        s = s + key_bias                       # padded key tokens never attended to
        s = s - jnp.max(s, axis=-1, keepdims=True)
        pr = jnp.exp(s)
        pr = pr * pl.reciprocal(jnp.sum(pr, axis=-1, keepdims=True), approx=True)
        ctx = jnp.einsum('gqk,gkd->gqd', pr.astype(bf16), v.astype(bf16),
                         preferred_element_type=jnp.float32)        # (G, T, dh)
        attn = jnp.concatenate(
            [ctx[i * Bt:(i + 1) * Bt].reshape(M, dh) for i in range(num_heads)],
            axis=-1)                                                # (M, E)
        attn = jnp.dot(attn.astype(bf16), wproj[l],
                       preferred_element_type=jnp.float32) + bproj[l]
        a = a + attn

        # ------------------------------- MLP --------------------------------
        h = _ln(a, ln2g[l], ln2b[l])
        h = jnp.dot(h.astype(bf16), w1[l],
                    preferred_element_type=jnp.float32) + b1[l]
        h = _gelu_exact(h)
        h = jnp.dot(h.astype(bf16), w2[l],
                    preferred_element_type=jnp.float32) + b2[l]
        return a + h

    a0 = x_ref[...].reshape(M, E)              # read tokens once; activation is a carry
    a = lax.fori_loop(0, num_layers, layer_body, a0, unroll=True)
    o_ref[...] = _ln(a, lnfg[...], lnfb[...]).reshape(Bt, T, E)   # fused final LayerNorm


def encoder_stack_pallas(tokens, mask_bias, p, num_heads):
    """tokens: (B, T_pad, E) zero-padded -> (B, T_pad, E) after L blocks + LN."""
    B, T_pad, E = tokens.shape
    L = p["wqkv"].shape[0]
    hid = p["w1"].shape[2]

    # Batch tile: fold batch to raise matmul M, but keep >= 2 parallel grid
    # steps whenever B >= 2 so both v7x TensorCores stay busy.
    b_tile = 1
    for cand in (8, 4, 2):
        if B % cand == 0 and (B // cand) >= 2:
            b_tile = cand
            break
    assert B % b_tile == 0

    x_map = lambda i: (i, 0, 0)      # activation slab per batch tile
    w3 = lambda i: (0, 0, 0)         # whole (L, ...) weight stack, resident across grid
    c2 = lambda i: (0, 0)            # 2-D constants

    in_specs = [
        pl.BlockSpec((b_tile, T_pad, E), x_map),
        pl.BlockSpec((1, T_pad), c2),           # additive key mask (hoisted)
        pl.BlockSpec((L, 1, E), w3),            # ln1_g
        pl.BlockSpec((L, 1, E), w3),            # ln1_b
        pl.BlockSpec((L, E, 3 * E), w3),        # wqkv   (bf16)
        pl.BlockSpec((L, E, E), w3),            # wproj  (bf16)
        pl.BlockSpec((L, 1, E), w3),            # bproj
        pl.BlockSpec((L, 1, E), w3),            # ln2_g
        pl.BlockSpec((L, 1, E), w3),            # ln2_b
        pl.BlockSpec((L, E, hid), w3),          # w1     (bf16)
        pl.BlockSpec((L, 1, hid), w3),          # b1
        pl.BlockSpec((L, hid, E), w3),          # w2     (bf16)
        pl.BlockSpec((L, 1, E), w3),            # b2
        pl.BlockSpec((1, E), c2),               # final ln gamma
        pl.BlockSpec((1, E), c2),               # final ln beta
    ]
    return pl.pallas_call(
        functools.partial(_encoder_stack_kernel,
                          num_heads=num_heads, num_layers=L),
        out_shape=jax.ShapeDtypeStruct((B, T_pad, E), jnp.float32),
        grid=(B // b_tile,),
        in_specs=in_specs,
        out_specs=pl.BlockSpec((b_tile, T_pad, E), x_map),
        compiler_params=pltpu.CompilerParams(
            dimension_semantics=("parallel",)),
    )(tokens, mask_bias,
      p["ln1_g"], p["ln1_b"], p["wqkv"], p["wproj"], p["bproj"],
      p["ln2_g"], p["ln2_b"], p["w1"], p["b1"], p["w2"], p["b2"],
      p["lnf_g"], p["lnf_b"])


# ----------------------------- plain-JAX glue -------------------------------

def random_indexes(size, rng):
    fwd = np.arange(size)
    rng.shuffle(fwd)
    if rng.random() < 0.5:
        fwd = [i for i in fwd if i % 2 == 1] + [i for i in fwd if i % 2 == 0]
    else:
        fwd = [i for i in fwd if i % 2 == 0] + [i for i in fwd if i % 2 == 1]
    fwd = np.asarray(fwd)
    bwd = np.argsort(fwd)
    return fwd, bwd


def patch_shuffle(patches_bte, ratio, rng):
    # TODO(synk): per-batch numpy random permutations + data-dependent token
    # gather stay host-side / plain-JAX (no clean static Pallas equivalent).
    B, T, _ = patches_bte.shape
    remain_T = int(T * (1 - ratio))
    idx = [random_indexes(T, rng) for _ in range(B)]
    fwd = np.stack([i[0] for i in idx], axis=-1)        # (T, B) as in reference
    bwd = np.stack([i[1] for i in idx], axis=-1)        # (T, B)
    fwd_bt = jnp.asarray(fwd.T, dtype=jnp.int32)        # (B, T)
    gathered = jnp.take_along_axis(patches_bte, fwd_bt[:, :, None], axis=1)
    return (gathered[:, :remain_T],
            jnp.asarray(fwd, jnp.int32), jnp.asarray(bwd, jnp.int32))


# ----------------------------- model forward --------------------------------

def mae_encoder_forward(img, p, cfg, rng):
    B = img.shape[0]
    E = cfg["emb_dim"]
    # patchify conv + positional embedding, fused in one Pallas kernel
    patches = patchify_pallas(img, p["wpatch"], p["bpatch"], p["pos"],
                              cfg["patch_width"])                  # (B, T, E)
    kept, _fwd, bwd = patch_shuffle(patches, cfg["mask_ratio"], rng)
    cls = jnp.broadcast_to(p["cls_token"], (B, 1, E))
    tok = jnp.concatenate([cls, kept], axis=1)                     # (B, t, E)
    t_real = tok.shape[1]
    t_pad = ((t_real + 15) // 16) * 16           # bf16 packs 16 sublanes / vreg
    tok = jnp.pad(tok, ((0, 0), (0, t_pad - t_real), (0, 0)))
    # additive key mask, precomputed once (hoisted out of the kernel)
    mask_bias = jnp.asarray(
        np.where(np.arange(t_pad) < t_real, 0.0, -1e30),
        dtype=jnp.float32).reshape(1, t_pad)
    out = encoder_stack_pallas(tok, mask_bias, p, cfg["num_head"])  # (B, t_pad, E)
    features = jnp.transpose(out[:, :t_real], (1, 0, 2))           # 'b t c -> t b c'
    return features, bwd


# ----------------------------- parameter init -------------------------------

def init_params(key, cfg):
    E = cfg["emb_dim"]
    C = cfg["image_channels"]
    pw = cfg["patch_width"]
    L = cfg["num_layer"]
    hid = 4 * E
    T = (cfg["image_height"] // cfg["patch_height"]) * (cfg["image_width"] // pw)
    keys = jax.random.split(key, 6 + 4 * L)
    s = 0.02
    p = {}
    p["cls_token"] = s * jax.random.normal(keys[0], (1, 1, E), jnp.float32)
    p["pos"] = s * jax.random.normal(keys[1], (T, E), jnp.float32)
    wconv = s * jax.random.normal(keys[2], (E, C, 1, pw), jnp.float32)  # Conv2d w
    p["wpatch"] = wconv.reshape(E, C * pw).T                            # (C*pw, E)
    p["bpatch"] = jnp.zeros((1, E), jnp.float32)

    kq = keys[3:3 + L]
    kpj = keys[3 + L:3 + 2 * L]
    k1 = keys[3 + 2 * L:3 + 3 * L]
    k2 = keys[3 + 3 * L:3 + 4 * L]

    def stack(fn):
        return jnp.stack([fn(i) for i in range(L)], axis=0)

    p["ln1_g"] = jnp.ones((L, 1, E), jnp.float32)
    p["ln1_b"] = jnp.zeros((L, 1, E), jnp.float32)
    p["ln2_g"] = jnp.ones((L, 1, E), jnp.float32)
    p["ln2_b"] = jnp.zeros((L, 1, E), jnp.float32)
    # matmul weights stored bf16 (halved DMA bytes; f32 accumulation in-kernel)
    p["wqkv"] = stack(lambda i: s * jax.random.normal(kq[i], (E, 3 * E))).astype(jnp.bfloat16)
    p["wproj"] = stack(lambda i: s * jax.random.normal(kpj[i], (E, E))).astype(jnp.bfloat16)
    p["bproj"] = jnp.zeros((L, 1, E), jnp.float32)
    p["w1"] = stack(lambda i: s * jax.random.normal(k1[i], (E, hid))).astype(jnp.bfloat16)
    p["b1"] = jnp.zeros((L, 1, hid), jnp.float32)
    p["w2"] = stack(lambda i: s * jax.random.normal(k2[i], (hid, E))).astype(jnp.bfloat16)
    p["b2"] = jnp.zeros((L, 1, E), jnp.float32)
    p["lnf_g"] = jnp.ones((1, E), jnp.float32)
    p["lnf_b"] = jnp.zeros((1, E), jnp.float32)
    return p


# --------------------------------- main --------------------------------------

if __name__ == "__main__":
    cfg = dict(image_width=16, image_height=8, image_channels=1,
               patch_width=2, patch_height=1, emb_dim=32,
               num_layer=2, num_head=2, mask_ratio=0.75)
    # reference conv kernel is (1, patch_width) -> module only consistent for ph=1
    assert cfg["patch_height"] == 1

    key = jax.random.PRNGKey(0)
    kp, kx = jax.random.split(key)
    params = init_params(kp, cfg)
    img = jax.random.normal(
        kx, (2, cfg["image_channels"], cfg["image_height"], cfg["image_width"]),
        dtype=jnp.float32)

    rng = np.random.default_rng(0)   # deterministic PatchShuffle randomness
    features, backward_indexes = mae_encoder_forward(img, params, cfg, rng)
    jax.block_until_ready((features, backward_indexes))

    T = (cfg["image_height"] // cfg["patch_height"]) * \
        (cfg["image_width"] // cfg["patch_width"])
    remain_T = int(T * (1 - cfg["mask_ratio"]))
    assert features.shape == (remain_T + 1, 2, cfg["emb_dim"]), features.shape
    assert backward_indexes.shape == (T, 2), backward_indexes.shape
    assert bool(jnp.all(jnp.isfinite(features)))
    print("KERNEL_OK")
</pallas_src>

<mosaic_0001>
module attributes {stable_mosaic.version = 11 : i64} {
  func.func @_patchify_kernel(%arg0: i32, %arg1: i32, %arg2: memref<1x64x2xf32, #tpu.memory_space<vmem>>, %arg3: memref<2x32xf32, #tpu.memory_space<vmem>>, %arg4: memref<1x32xf32, #tpu.memory_space<vmem>>, %arg5: memref<64x32xf32, #tpu.memory_space<vmem>>, %arg6: memref<1x64x32xf32, #tpu.memory_space<vmem>>) attributes {dimension_semantics = [#tpu.dimension_semantics<parallel>, #tpu.dimension_semantics<parallel>], iteration_bounds = array<i64: 2, 1>, scalar_prefetch = 0 : i64, scratch_operands = 0 : i64, tpu.core_type = #tpu.core_type<tc>, window_params = [{transform_indices = @transform_0, window_bounds = array<i64: 1, 64, 2>}, {pipeline_mode = #tpu.pipeline_mode<synchronous>, transform_indices = @transform_1, window_bounds = array<i64: 2, 32>}, {pipeline_mode = #tpu.pipeline_mode<synchronous>, transform_indices = @transform_2, window_bounds = array<i64: 1, 32>}, {transform_indices = @transform_3, window_bounds = array<i64: 64, 32>}, {transform_indices = @transform_4, window_bounds = array<i64: 1, 64, 32>}]} {
    %c0 = arith.constant 0 : index
    %c0_0 = arith.constant 0 : index
    %0 = vector.load %arg4[%c0, %c0_0] : memref<1x32xf32, #tpu.memory_space<vmem>>, vector<1x32xf32>
    %c0_1 = arith.constant 0 : index
    %c0_2 = arith.constant 0 : index
    %1 = vector.load %arg5[%c0_1, %c0_2] : memref<64x32xf32, #tpu.memory_space<vmem>>, vector<64x32xf32>
    %2 = vector.broadcast %0 : vector<1x32xf32> to vector<64x32xf32>
    %3 = arith.addf %2, %1 : vector<64x32xf32>
    %c0_3 = arith.constant 0 : index
    %c0_4 = arith.constant 0 : index
    %c0_5 = arith.constant 0 : index
    %4 = vector.load %arg2[%c0_3, %c0_4, %c0_5] : memref<1x64x2xf32, #tpu.memory_space<vmem>>, vector<1x64x1xf32>
    %5 = vector.shape_cast %4 : vector<1x64x1xf32> to vector<64x1xf32>
    %c0_6 = arith.constant 0 : index
    %c0_7 = arith.constant 0 : index
    %6 = vector.load %arg3[%c0_6, %c0_7] : memref<2x32xf32, #tpu.memory_space<vmem>>, vector<1x32xf32>
    %7 = vector.broadcast %5 : vector<64x1xf32> to vector<64x32xf32>
    %8 = vector.broadcast %6 : vector<1x32xf32> to vector<64x32xf32>
    %9 = arith.mulf %7, %8 : vector<64x32xf32>
    %10 = arith.addf %3, %9 : vector<64x32xf32>
    %c0_8 = arith.constant 0 : index
    %c0_9 = arith.constant 0 : index
    %c1 = arith.constant 1 : index
    %11 = vector.load %arg2[%c0_8, %c0_9, %c1] : memref<1x64x2xf32, #tpu.memory_space<vmem>>, vector<1x64x1xf32>
    %12 = vector.shape_cast %11 : vector<1x64x1xf32> to vector<64x1xf32>
    %c1_10 = arith.constant 1 : index
    %c0_11 = arith.constant 0 : index
    %13 = vector.load %arg3[%c1_10, %c0_11] : memref<2x32xf32, #tpu.memory_space<vmem>>, vector<1x32xf32>
    %14 = vector.broadcast %12 : vector<64x1xf32> to vector<64x32xf32>
    %15 = vector.broadcast %13 : vector<1x32xf32> to vector<64x32xf32>
    %16 = arith.mulf %14, %15 : vector<64x32xf32>
    %17 = arith.addf %10, %16 : vector<64x32xf32>
    %c0_12 = arith.constant 0 : index
    %c0_13 = arith.constant 0 : index
    %c0_14 = arith.constant 0 : index
    %18 = vector.load %arg6[%c0_12, %c0_13, %c0_14] : memref<1x64x32xf32, #tpu.memory_space<vmem>>, vector<1x64x32xf32>
    %19 = vector.shape_cast %18 : vector<1x64x32xf32> to vector<64x32xf32>
    %20 = vector.shape_cast %17 : vector<64x32xf32> to vector<1x64x32xf32>
    tpu.vector_store %arg6[%c0_12, %c0_13, %c0_14], %20 {strides = array<i32>} : memref<1x64x32xf32, #tpu.memory_space<vmem>>, vector<1x64x32xf32>,
    return
  }
  func.func @transform_0(%arg0: i32, %arg1: i32) -> (i32, i32, i32) {
    %c0_i32 = arith.constant 0 : i32
    %c0_i32_0 = arith.constant 0 : i32
    return %arg0, %arg1, %c0_i32 : i32, i32, i32
  }
  func.func @transform_1(%arg0: i32, %arg1: i32) -> (i32, i32) {
    %c0_i32 = arith.constant 0 : i32
    %c0_i32_0 = arith.constant 0 : i32
    %c0_i32_1 = arith.constant 0 : i32
    return %c0_i32, %c0_i32_0 : i32, i32
  }
  func.func @transform_2(%arg0: i32, %arg1: i32) -> (i32, i32) {
    %c0_i32 = arith.constant 0 : i32
    %c0_i32_0 = arith.constant 0 : i32
    %c0_i32_1 = arith.constant 0 : i32
    return %c0_i32, %c0_i32_0 : i32, i32
  }
  func.func @transform_3(%arg0: i32, %arg1: i32) -> (i32, i32) {
    %c0_i32 = arith.constant 0 : i32
    %c0_i32_0 = arith.constant 0 : i32
    return %arg1, %c0_i32 : i32, i32
  }
  func.func @transform_4(%arg0: i32, %arg1: i32) -> (i32, i32, i32) {
    %c0_i32 = arith.constant 0 : i32
    %c0_i32_0 = arith.constant 0 : i32
    return %arg0, %arg1, %c0_i32 : i32, i32, i32
  }
}

</mosaic_0001>

<bundles_post_ra>
// kernel: tpu_custom_call.1
= control target key start
LH: loop header
LB: loop body
LE: loop exit
PB: predicated region body
PF: predicated region fallthrough
CT: control target
= control target key end

     0   :  { %s613_s15 = smov 0   ;;  %s615_s16 = smov 0   ;;  %s704_s0 = inlined_call_operand.vmem [shape: f32[2,64,2], index: 0, kind: input, shape index: {}]   ;;  %s705_s1 = inlined_call_operand.vmem [shape: f32[2,32], index: 1, kind: input, shape index: {}]   ;;  %s706_s2 = inlined_call_operand.vmem [shape: f32[1,32], index: 2, kind: input, shape index: {}]   ;;  %s707_s3 = inlined_call_operand.vmem [shape: f32[64,32], index: 3, kind: input, shape index: {}]   ;;  %s708_s4 = inlined_call_operand.vmem [shape: f32[2,64,32], index: 4, kind: output, shape index: {}]  }
   0x1   :  { %s617_s17 = smov 0  }
   0x2 LB: > { %s26_s18 = sadd.s32 1, %s580_s16  ;;  %p520_p0 = scmp.ge.s32.totalorder %s584_s17, 1  ;;  %s584_s17 = sphi %s617_s17, %s14_s17   ;;  %s580_s16 = sphi %s615_s16, %s710_s16   ;;  %s576_s15 = sphi %s613_s15, %s709_s15  }
   0x3   : > { %p28_p1 = scmp.ge.s32.totalorder %s26_s18, 2  ;;  %p194_p2 = scmp.lt.s32.totalorder %s584_s17, 3 }
   0x5   : > { %s712_s18 = smov (%p28_p1, %s26_s18), 0  ;;  %p195_p3 = pnand %p520_p0, %p194_p2 }
   0x6   : > { %p234_p4 = scmp.lt.s32.totalorder (!%p195_p3), %s576_s15, 1 }
   0x7   : > { %198 = sbr.rel (%p195_p3) target bundleno = 174 (0xae), region = 36 }
   0xc   : > { %v586_v0 = vmov 0   ;;  %s714_s15 = smov (!%p234_p4, %s576_s15), 1  ;;  %v587_v9 = vmov 1   ;;  %v525_v16 = vld [vmem:[%s706_s2] ss:$0 sm:$0xff]  ;;  %v261_v19 = vld [vmem:[%s707_s3 + $0x8] sm:$0xff] }
   0xd   : > { %559 = vset.pattern.permute.xlu1 %v586_v0  ;;  %558 = vset.pattern.permute.xlu0 %v586_v0  ;;  %s530_s19 = sshll.u32 %s714_s15, 6  ;;  %v526_v17 = vld [vmem:[%s705_s1] ss:$0 sm:$0xff]  ;;  %v262_v24 = vld [vmem:[%s707_s3 + $0x10] sm:$0xff]  ;;  %v263_v25 = vld [vmem:[%s707_s3 + $0x18] sm:$0xff]  ;;  %v275_v26 = vadd.f32 %v525_v16, %v261_v19  ;;  %vm404_vm0 = vcmask 261120  }
   0xe   : > { %s241_s22 = scalar_lea.vmem %s704_s0, %s530_s19  ;;  %v260_v18 = vld [vmem:[%s707_s3] sm:$0xff]  ;;  %v276_v29 = vadd.f32 %v525_v16, %v262_v24  ;;  %v277_v32 = vadd.f32 %v525_v16, %v263_v25  ;;  %v265_v37 = vld [vmem:[%s707_s3 + $0x28] sm:$0xff]  ;;  %v267_v51 = vld [vmem:[%s707_s3 + $0x38] sm:$0xff] }
   0xf   : > { %v284_v1 = vld [vmem:[%s241_s22 + $0x10] sm:$0xff]  ;;  %v282_v2 = vld [vmem:[%s241_s22] sm:$0xff]  ;;  %v285_v3 = vld [vmem:[%s241_s22 + $0x18] sm:$0xff]  ;;  %v274_v22 = vadd.f32 %v525_v16, %v260_v18  ;;  %v279_v43 = vadd.f32 %v525_v16, %v265_v37  ;;  %v281_v59 = vadd.f32 %v525_v16, %v267_v51 }
  0x10   : > { %303 = vperm.xlu1 %559, %v284_v1   ;;  %293 = vperm.xlu0 %558, %v282_v2   ;;  %v283_v4 = vld [vmem:[%s241_s22 + $0x8] sm:$0xff]  ;;  %v286_v6 = vld [vmem:[%s241_s22 + $0x20] sm:$0xff]  ;;  %v289_v7 = vld [vmem:[%s241_s22 + $0x38] sm:$0xff] }
  0x11   : > { %v287_v5 = vld [vmem:[%s241_s22 + $0x28] sm:$0xff]  ;;  %v288_v8 = vld [vmem:[%s241_s22 + $0x30] sm:$0xff]  ;;  %v527_v28 = vld [vmem:[%s705_s1 + $0x1] ss:$0 sm:$0xff]  ;;  %s671_s22 = scalar_lea.vmem %s708_s4, %s530_s19 }
  0x12   : > { %v264_v38 = vld [vmem:[%s707_s3 + $0x20] sm:$0xff]  ;;  %v266_v52 = vld [vmem:[%s707_s3 + $0x30] sm:$0xff] }
  0x13   : > { %v278_v45 = vadd.f32 %v525_v16, %v264_v38  ;;  %v280_v60 = vadd.f32 %v525_v16, %v266_v52 }
  0x14   : > { %308 = vperm.xlu1 %559, %v285_v3   ;;  %298 = vperm.xlu0 %558, %v283_v4  }
  0x18   : > { %318 = vperm.xlu1 %559, %v287_v5   ;;  %313 = vperm.xlu0 %558, %v286_v6  }
  0x1c   : > { %328 = vperm.xlu1 %559, %v289_v7   ;;  %323 = vperm.xlu0 %558, %v288_v8  }
  0x20   : > { %561 = vset.pattern.permute.xlu1 %v587_v9  ;;  %560 = vset.pattern.permute.xlu0 %v587_v9 }
  0x21   : > { %357 = vperm.xlu1 %561, %v283_v4   ;;  %353 = vperm.xlu0 %560, %v282_v2  }
  0x25   : > { %361 = vperm.xlu1 %561, %v284_v1   ;;  %365 = vperm.xlu0 %560, %v285_v3  }
  0x29   : > { %369 = vperm.xlu1 %561, %v286_v6   ;;  %373 = vperm.xlu0 %560, %v287_v5  }
  0x2d   : > { %377 = vperm.xlu1 %561, %v288_v8   ;;  %381 = vperm.xlu0 %560, %v289_v7  }
  0x8b   : > { %v304_v10 = vpop.permute.xlu1 %303  ;;  %v294_v11 = vpop.permute.xlu0 %293 }
  0x8c   : > { %v335_v23 = vmul.f32 %v526_v17, %v294_v11  ;;  %v337_v30 = vmul.f32 %v526_v17, %v304_v10 }
  0x8e   : > { %v343_v31 = vadd.f32 %v335_v23, %v274_v22  ;;  %v345_v49 = vadd.f32 %v337_v30, %v276_v29 }
  0x8f   : > { %v309_v12 = vpop.permute.xlu1 %308  ;;  %v299_v13 = vpop.permute.xlu0 %298 }
  0x90   : > { %v336_v27 = vmul.f32 %v526_v17, %v299_v13  ;;  %v338_v35 = vmul.f32 %v526_v17, %v309_v12 }
  0x92   : > { %v344_v36 = vadd.f32 %v336_v27, %v275_v26  ;;  %v346_v50 = vadd.f32 %v338_v35, %v277_v32 }
  0x93   : > { %v319_v14 = vpop.permute.xlu1 %318  ;;  %v314_v15 = vpop.permute.xlu0 %313 }
  0x94   : > { %v340_v44 = vmul.f32 %v526_v17, %v319_v14  ;;  %v339_v46 = vmul.f32 %v526_v17, %v314_v15 }
  0x96   : > { %v348_v57 = vadd.f32 %v340_v44, %v279_v43  ;;  %v347_v58 = vadd.f32 %v339_v46, %v278_v45 }
  0x97   : > { %v329_v20 = vpop.permute.xlu1 %328  ;;  %v324_v21 = vpop.permute.xlu0 %323 }
  0x98   : > { %v342_v63 = vmul.f32 %v526_v17, %v329_v20  ;;  %v341_v0 = vmul.f32 %v526_v17, %v324_v21 }
  0x9a   : > { %v350_v7 = vadd.f32 %v342_v63, %v281_v59  ;;  %v349_v8 = vadd.f32 %v341_v0, %v280_v60 }
  0x9c   : > { %v358_v33 = vpop.permute.xlu1 %357  ;;  %v354_v34 = vpop.permute.xlu0 %353 }
  0x9d   : > { %v389_v39 = vmul.f32 %v527_v28, %v358_v33  ;;  %v388_v40 = vmul.f32 %v527_v28, %v354_v34 }
  0x9f   : > { %v397_v41 = vadd.f32 %v389_v39, %v344_v36  ;;  %v396_v42 = vadd.f32 %v388_v40, %v343_v31 }
  0xa0   : > { %v362_v47 = vpop.permute.xlu1 %361  ;;  %v366_v48 = vpop.permute.xlu0 %365 }
  0xa1   : > { %406 = vst.msk [vmem:[%s671_s22 + $0x8] sm:$0xff] %vm404_vm0, %v397_v41  ;;  %405 = vst.msk [vmem:[%s671_s22] sm:$0xff] %vm404_vm0, %v396_v42  ;;  %v390_v53 = vmul.f32 %v527_v28, %v362_v47  ;;  %v391_v54 = vmul.f32 %v527_v28, %v366_v48 }
  0xa3   : > { %v398_v55 = vadd.f32 %v390_v53, %v345_v49  ;;  %v399_v56 = vadd.f32 %v391_v54, %v346_v50 }
  0xa4   : > { %v370_v61 = vpop.permute.xlu1 %369  ;;  %v374_v62 = vpop.permute.xlu0 %373 }
  0xa5   : > { %407 = vst.msk [vmem:[%s671_s22 + $0x10] sm:$0xff] %vm404_vm0, %v398_v55  ;;  %408 = vst.msk [vmem:[%s671_s22 + $0x18] sm:$0xff] %vm404_vm0, %v399_v56  ;;  %v392_v1 = vmul.f32 %v527_v28, %v370_v61  ;;  %v393_v2 = vmul.f32 %v527_v28, %v374_v62 }
  0xa7   : > { %v400_v3 = vadd.f32 %v392_v1, %v347_v58  ;;  %v401_v4 = vadd.f32 %v393_v2, %v348_v57 }
  0xa8   : > { %v378_v5 = vpop.permute.xlu1 %377  ;;  %v382_v6 = vpop.permute.xlu0 %381 }
  0xa9   : > { %409 = vst.msk [vmem:[%s671_s22 + $0x20] sm:$0xff] %vm404_vm0, %v400_v3  ;;  %410 = vst.msk [vmem:[%s671_s22 + $0x28] sm:$0xff] %vm404_vm0, %v401_v4  ;;  %v394_v9 = vmul.f32 %v527_v28, %v378_v5  ;;  %v395_v10 = vmul.f32 %v527_v28, %v382_v6 }
  0xab   : > { %v402_v11 = vadd.f32 %v394_v9, %v349_v8  ;;  %v403_v12 = vadd.f32 %v395_v10, %v350_v7 }
  0xad   : > { %411 = vst.msk [vmem:[%s671_s22 + $0x30] sm:$0xff] %vm404_vm0, %v402_v11  ;;  %412 = vst.msk [vmem:[%s671_s22 + $0x38] sm:$0xff] %vm404_vm0, %v403_v12 }
  0xae PF: > { %s14_s17 = sadd.s32 1, %s584_s17   ;;  %s709_s15 = smov %s580_s16 }
  0xaf   : > { %p11_p5 = scmp.ge.s32.totalorder %s14_s17, 4   ;;  %s710_s16 = smov %s712_s18 }
  0xb1   :  { %13 = sbr.rel (!%p11_p5) target bundleno = 2 (0x2), region = 69 }

</bundles_post_ra>
